<compile_context>
chip_gen: v5e
topology: v5e:2x2
jax: 0.10.0
libtpu: 0.0.40
codegen_flags: <defaults>
</compile_context>

<pallas_src>
import jax
import jax.numpy as jnp
from jax import lax
from jax.experimental import pallas as pl
from jax.experimental.pallas import tpu as pltpu

BN_EPS = 1e-5


def _round_up(x, m):
    return (x + m - 1) // m * m


def _vmem_limit_bytes():
    """Scoped-VMEM limit: ~75% of physical, i.e. 48 MiB on v7x, 96 MiB on v5e/v6e."""
    try:
        phys = int(pltpu.get_tpu_info().vmem_capacity_bytes)
    except Exception:
        phys = 64 * 1024 * 1024  # query unavailable -> assume smallest generation (v7x)
    return int(max(32 * 1024 * 1024, min(phys * 3 // 4, 96 * 1024 * 1024)))


def _pick_tile_hw(N, HW, Cin, Cout, x_bytes, out_bytes, vmem_limit):
    """Largest H*W tile (multiple of 128, or the full extent) that fits the VMEM
    budget, accounting for the resident bf16 weight, and keeping >= 2 grid cells
    when N == 1 so both v7x TensorCores get work."""
    w_bytes = Cout * Cin * 2                                  # resident bf16 weight
    budget = int(vmem_limit * 0.6) - 2 * w_bytes - 8 * Cout * 4
    # per H*W column: double-buffered x + out tiles, plus the live f32 y intermediate.
    per_col = 2 * Cin * x_bytes + 2 * Cout * out_bytes + 4 * Cout
    tile = max(128, min(8192, budget // max(per_col, 1)) // 128 * 128)
    if HW <= tile:
        tile = HW                                             # single full-extent tile (legal)
    if N == 1 and HW > 128:
        tile = min(tile, _round_up(-(-HW // 2), 128))         # keep >= 2 grid cells (v7x)
    return tile


def _make_kernels(HW, tile_hw):
    ragged = (HW % tile_hw) != 0

    def stats_kernel(x_ref, w_ref, s1_ref, s2_ref):
        # x_ref: (1, Cin, tile_hw); w_ref: (Cout, Cin) bf16 (resident);
        # s1_ref/s2_ref: (1, 1, Cout, 1) f32 per-tile partial sums.
        x = x_ref[0]                                          # (Cin, tile_hw)
        if ragged:
            # Last H*W tile overhangs the array: its out-of-range lanes are garbage
            # and MUST be zeroed before they feed the batch statistics.
            valid = HW - pl.program_id(1) * tile_hw
            col = lax.broadcasted_iota(jnp.int32, x.shape, 1)
            x = jnp.where(col < valid, x, jnp.zeros_like(x))
        y = jnp.dot(w_ref[...], x.astype(jnp.bfloat16),
                    preferred_element_type=jnp.float32)       # (Cout, tile_hw) f32
        s1_ref[...] = jnp.sum(y, axis=1, keepdims=True)[None, None]
        s2_ref[...] = jnp.sum(y * y, axis=1, keepdims=True)[None, None]

    def apply_kernel(x_ref, w_ref, shift_ref, o_ref):
        # Folded BN: y = (scale * W) @ x ; out = max(y + shift, 0).
        # Ragged last tile: garbage input lanes only produce garbage output lanes,
        # and Pallas masks the ragged output store automatically.
        y = jnp.dot(w_ref[...], x_ref[0].astype(jnp.bfloat16),
                    preferred_element_type=jnp.float32)       # (Cout, tile_hw) f32
        o_ref[...] = jnp.maximum(y + shift_ref[...], 0.0).astype(o_ref.dtype)[None]

    return stats_kernel, apply_kernel


def conv_bn_relu(x_nchw, weight, bias, gamma, beta, *, tile_hw=None, out_dtype=None):
    """Fused 1x1 Conv (stride 1, no padding) + BatchNorm2d (training-mode batch
    statistics) + ReLU, NCHW layout (PyTorch ConvBNReLU forward semantics).

    x_nchw: (N, Cin, H, W) f32 or bf16
    weight: (Cout, Cin, 1, 1)
    bias:   (Cout,)  -- mathematically cancelled by training-mode BN (unused)
    gamma, beta: (Cout,) BN affine parameters
    returns (N, Cout, H, W), dtype = out_dtype (default: x dtype)
    """
    # TODO(synk): only the module defaults (kernel_size=1, stride=1, padding=0,
    # dilation=1) are implemented; general spatial kernels need an im2col feeder
    # in front of the same tiled matmul kernels.
    N, Cin, H, W = x_nchw.shape
    Cout = weight.shape[0]
    assert weight.shape == (Cout, Cin, 1, 1)
    HW = H * W
    M = N * HW
    f32 = jnp.float32
    if out_dtype is None:
        out_dtype = x_nchw.dtype

    vmem_limit = _vmem_limit_bytes()
    if tile_hw is None:
        tile_hw = _pick_tile_hw(N, HW, Cin, Cout,
                                jnp.dtype(x_nchw.dtype).itemsize,
                                jnp.dtype(out_dtype).itemsize, vmem_limit)
    assert tile_hw == HW or tile_hw % 128 == 0
    num_hw_tiles = pl.cdiv(HW, tile_hw)

    x3 = x_nchw.reshape(N, Cin, HW)                  # bitcast, no HBM copy
    w_f32 = weight.reshape(Cout, Cin).astype(f32)
    w_bf16 = w_f32.astype(jnp.bfloat16)              # tiny; cast in XLA is free
    # Conv bias deliberately dropped: training-mode BN subtracts the batch mean,
    # so a per-channel pre-BN bias cancels exactly (dead VPU work + dead DMA).
    del bias

    stats_kernel, apply_kernel = _make_kernels(HW, tile_hw)

    x_spec = pl.BlockSpec((1, Cin, tile_hw), lambda n, j: (n, 0, j))
    # TODO(synk): for Cin*Cout >= ~1M on v7x (64 MiB VMEM) add a Cout grid axis so
    # the resident weight block is (tile_cout, Cin) instead of the full matrix.
    w_spec = pl.BlockSpec((Cout, Cin), lambda n, j: (0, 0))   # DMA'd once, stays resident
    cparams = pltpu.CompilerParams(
        dimension_semantics=("parallel", "parallel"),         # shards across v7x's 2 TCs
        vmem_limit_bytes=vmem_limit,
    )
    grid = (N, num_hw_tiles)
    stat_spec = pl.BlockSpec((1, 1, Cout, 1), lambda n, j: (n, j, 0, 0))

    # Pass 1: per-tile partial per-channel [sum(y), sum(y*y)], y = W @ x.
    stats_s1, stats_s2 = pl.pallas_call(
        stats_kernel,
        out_shape=(jax.ShapeDtypeStruct((N, num_hw_tiles, Cout, 1), f32),
                   jax.ShapeDtypeStruct((N, num_hw_tiles, Cout, 1), f32)),
        grid=grid,
        in_specs=[x_spec, w_spec],
        out_specs=(stat_spec, stat_spec),
        compiler_params=cparams,
    )(x3, w_bf16)

    # Tiny cross-tile reduction + BN coefficient folding in XLA (O(grid * Cout)).
    s1 = jnp.sum(stats_s1, axis=(0, 1))[:, 0]                 # (Cout,)
    s2 = jnp.sum(stats_s2, axis=(0, 1))[:, 0]
    mean = s1 / M                                             # real element count
    # NOTE: E[y^2]-E[y]^2 in f32 can lose precision for |mean| >> std at very large M;
    # switch to per-tile mean-shifted sums if tighter parity with PyTorch is required.
    var = jnp.maximum(s2 / M - mean * mean, 0.0)              # biased variance (PyTorch BN)
    scale = gamma.astype(f32) * lax.rsqrt(var + BN_EPS)       # (Cout,)
    shift = beta.astype(f32) - mean * scale
    w_scaled = (w_f32 * scale[:, None]).astype(jnp.bfloat16)  # fold BN scale into the weight
    shift_col = shift.reshape(Cout, 1)

    # Pass 2: recompute the cheap 1x1 matmul with the folded weight; add shift + ReLU.
    # (Recompute avoids an HBM round trip of the (Cout, M) intermediate.)
    # TODO(synk): for strongly channel-reducing convs (Cin >> Cout) materializing y in
    # pass 1 and re-reading it here would read less HBM than recomputing.
    out3 = pl.pallas_call(
        apply_kernel,
        out_shape=jax.ShapeDtypeStruct((N, Cout, HW), out_dtype),
        grid=grid,
        in_specs=[x_spec, w_spec, pl.BlockSpec((Cout, 1), lambda n, j: (0, 0))],
        out_specs=pl.BlockSpec((1, Cout, tile_hw), lambda n, j: (n, 0, j)),
        compiler_params=cparams,
    )(x3, w_scaled, shift_col)

    return out3.reshape(N, Cout, H, W)               # bitcast, no HBM copy


def _reference(x_nchw, weight, bias, gamma, beta):
    """Pure-JAX f32 reference (same semantics, bias included) for a sanity check."""
    y = lax.conv_general_dilated(
        x_nchw.astype(jnp.float32), weight.astype(jnp.float32),
        window_strides=(1, 1), padding="VALID",
        dimension_numbers=("NCHW", "OIHW", "NCHW"),
    ) + bias[None, :, None, None]
    mean = jnp.mean(y, axis=(0, 2, 3), keepdims=True)
    var = jnp.mean((y - mean) ** 2, axis=(0, 2, 3), keepdims=True)
    y_hat = (y - mean) / jnp.sqrt(var + BN_EPS)
    return jnp.maximum(y_hat * gamma[None, :, None, None] + beta[None, :, None, None], 0.0)


if __name__ == "__main__":
    N, Cin, Cout, H, W = 2, 4, 8, 16, 16

    key = jax.random.PRNGKey(0)
    kx, kw, kb = jax.random.split(key, 3)

    x = jax.random.normal(kx, (N, Cin, H, W), dtype=jnp.float32)

    # Deterministic init mirroring the module's init_weight():
    #   conv weight: kaiming_normal_(a=1) -> std = 1/sqrt(fan_in); BN: weight=1, bias=0.
    fan_in = Cin * 1 * 1
    weight = jax.random.normal(kw, (Cout, Cin, 1, 1), dtype=jnp.float32) * (fan_in ** -0.5)
    # Nonzero conv bias to exercise the "bias cancels under training-mode BN" fold
    # (module init sets it to 0; forward semantics hold for any value).
    bias = 0.1 * jax.random.normal(kb, (Cout,), dtype=jnp.float32)
    gamma = jnp.ones((Cout,), dtype=jnp.float32)
    beta = jnp.zeros((Cout,), dtype=jnp.float32)

    ref = _reference(x, weight, bias, gamma, beta)
    TOL = dict(atol=5e-2, rtol=5e-2)   # bf16 MXU inputs

    # Default tiling (grid (N, 1) = 2 cells).
    out = conv_bn_relu(x, weight, bias, gamma, beta)
    jax.block_until_ready(out)
    assert out.shape == (N, Cout, H, W) and out.dtype == x.dtype
    assert jnp.allclose(out, ref, **TOL)

    # Forced multi-tile path along H*W: cross-tile batch-stat aggregation + pipelining.
    out_tiled = conv_bn_relu(x, weight, bias, gamma, beta, tile_hw=128)
    jax.block_until_ready(out_tiled)
    assert jnp.allclose(out_tiled, ref, **TOL)

    # bf16 activations in HBM (halved read) + bf16 output (halved write).
    out_bf16 = conv_bn_relu(x.astype(jnp.bfloat16), weight, bias, gamma, beta)
    jax.block_until_ready(out_bf16)
    assert out_bf16.dtype == jnp.bfloat16
    assert jnp.allclose(out_bf16.astype(jnp.float32), ref, **TOL)

    # Ragged H*W (not a multiple of 128) with N=1: exercises the in-kernel lane mask
    # for the stats pass and the >=2-grid-cell split for v7x.
    xr = jax.random.normal(kx, (1, Cin, 16, 10), dtype=jnp.float32)
    refr = _reference(xr, weight, bias, gamma, beta)
    outr = conv_bn_relu(xr, weight, bias, gamma, beta)
    jax.block_until_ready(outr)
    assert outr.shape == (1, Cout, 16, 10)
    assert jnp.allclose(outr, refr, **TOL)

    print("KERNEL_OK")
</pallas_src>

<mosaic_0001>
module attributes {stable_mosaic.version = 11 : i64} {
  func.func @stats_kernel(%arg0: i32, %arg1: i32, %arg2: memref<1x4x256xf32, #tpu.memory_space<vmem>>, %arg3: memref<8x4xbf16, #tpu.memory_space<vmem>>, %arg4: memref<1x1x8x1xf32, #tpu.memory_space<vmem>>, %arg5: memref<1x1x8x1xf32, #tpu.memory_space<vmem>>) attributes {dimension_semantics = [#tpu.dimension_semantics<parallel>, #tpu.dimension_semantics<parallel>], iteration_bounds = array<i64: 2, 1>, scalar_prefetch = 0 : i64, scratch_operands = 0 : i64, tpu.core_type = #tpu.core_type<tc>, window_params = [{transform_indices = @transform_0, window_bounds = array<i64: 1, 4, 256>}, {pipeline_mode = #tpu.pipeline_mode<synchronous>, transform_indices = @transform_1, window_bounds = array<i64: 8, 4>}, {transform_indices = @transform_2, window_bounds = array<i64: 1, 1, 8, 1>}, {transform_indices = @transform_3, window_bounds = array<i64: 1, 1, 8, 1>}]} {
    %c0 = arith.constant 0 : index
    %c0_0 = arith.constant 0 : index
    %c0_1 = arith.constant 0 : index
    %0 = vector.load %arg2[%c0, %c0_0, %c0_1] : memref<1x4x256xf32, #tpu.memory_space<vmem>>, vector<1x4x256xf32>
    %1 = vector.shape_cast %0 : vector<1x4x256xf32> to vector<4x256xf32>
    %c0_2 = arith.constant 0 : index
    %c0_3 = arith.constant 0 : index
    %2 = vector.load %arg3[%c0_2, %c0_3] : memref<8x4xbf16, #tpu.memory_space<vmem>>, vector<8x4xbf16>
    %3 = arith.truncf %1 : vector<4x256xf32> to vector<4x256xbf16>
    %cst = arith.constant dense<0.000000e+00> : vector<8x256xf32>
    %4 = tpu.matmul %2, %3, %cst {dimension_numbers = #tpu.dot_dimension_numbers<[1], [0], [0], [1], [0, 0, 1, 1], [], []>} : vector<8x4xbf16>, vector<4x256xbf16>, vector<8x256xf32> -> vector<8x256xf32>
    %cst_4 = arith.constant dense<0.000000e+00> : vector<8xf32>
    %5 = vector.multi_reduction <add>, %4, %cst_4 [1] : vector<8x256xf32> to vector<8xf32>
    %6 = vector.shape_cast %5 : vector<8xf32> to vector<8x1xf32>
    %7 = vector.shape_cast %6 : vector<8x1xf32> to vector<1x1x8x1xf32>
    %c0_5 = arith.constant 0 : index
    %c0_6 = arith.constant 0 : index
    %c0_7 = arith.constant 0 : index
    %c0_8 = arith.constant 0 : index
    %8 = vector.load %arg4[%c0_5, %c0_6, %c0_7, %c0_8] : memref<1x1x8x1xf32, #tpu.memory_space<vmem>>, vector<1x1x8x1xf32>
    tpu.vector_store %arg4[%c0_5, %c0_6, %c0_7, %c0_8], %7 {strides = array<i32>} : memref<1x1x8x1xf32, #tpu.memory_space<vmem>>, vector<1x1x8x1xf32>,
    %9 = arith.mulf %4, %4 : vector<8x256xf32>
    %cst_9 = arith.constant dense<0.000000e+00> : vector<8xf32>
    %10 = vector.multi_reduction <add>, %9, %cst_9 [1] : vector<8x256xf32> to vector<8xf32>
    %11 = vector.shape_cast %10 : vector<8xf32> to vector<8x1xf32>
    %12 = vector.shape_cast %11 : vector<8x1xf32> to vector<1x1x8x1xf32>
    %c0_10 = arith.constant 0 : index
    %c0_11 = arith.constant 0 : index
    %c0_12 = arith.constant 0 : index
    %c0_13 = arith.constant 0 : index
    %13 = vector.load %arg5[%c0_10, %c0_11, %c0_12, %c0_13] : memref<1x1x8x1xf32, #tpu.memory_space<vmem>>, vector<1x1x8x1xf32>
    tpu.vector_store %arg5[%c0_10, %c0_11, %c0_12, %c0_13], %12 {strides = array<i32>} : memref<1x1x8x1xf32, #tpu.memory_space<vmem>>, vector<1x1x8x1xf32>,
    return
  }
  func.func @transform_0(%arg0: i32, %arg1: i32) -> (i32, i32, i32) {
    %c0_i32 = arith.constant 0 : i32
    %c0_i32_0 = arith.constant 0 : i32
    return %arg0, %c0_i32, %arg1 : i32, i32, i32
  }
  func.func @transform_1(%arg0: i32, %arg1: i32) -> (i32, i32) {
    %c0_i32 = arith.constant 0 : i32
    %c0_i32_0 = arith.constant 0 : i32
    %c0_i32_1 = arith.constant 0 : i32
    return %c0_i32, %c0_i32_0 : i32, i32
  }
  func.func @transform_2(%arg0: i32, %arg1: i32) -> (i32, i32, i32, i32) {
    %c0_i32 = arith.constant 0 : i32
    %c0_i32_0 = arith.constant 0 : i32
    %c0_i32_1 = arith.constant 0 : i32
    return %arg0, %arg1, %c0_i32, %c0_i32_0 : i32, i32, i32, i32
  }
  func.func @transform_3(%arg0: i32, %arg1: i32) -> (i32, i32, i32, i32) {
    %c0_i32 = arith.constant 0 : i32
    %c0_i32_0 = arith.constant 0 : i32
    %c0_i32_1 = arith.constant 0 : i32
    return %arg0, %arg1, %c0_i32, %c0_i32_0 : i32, i32, i32, i32
  }
}

</mosaic_0001>

<bundles_post_ra>
// kernel: tpu_custom_call.1
= control target key start
LH: loop header
LB: loop body
LE: loop exit
PB: predicated region body
PF: predicated region fallthrough
CT: control target
= control target key end

     0   :  { %9 = vsyncpa [#allocation3], 0  ;;  %s686_s0 = inlined_call_operand.hbm [shape: f32[2,4,256], index: 0, kind: input, shape index: {}]   ;;  %s687_s1 = inlined_call_operand.vmem [shape: bf16[8,4], index: 1, kind: input, shape index: {}]   ;;  %s688_s2 = inlined_call_operand.vmem [shape: f32[2,1,8,1], index: 2, kind: output, shape index: {0}]   ;;  %s689_s3 = inlined_call_operand.vmem [shape: f32[2,1,8,1], index: 3, kind: output, shape index: {1}]  }
   0x1   :  { %11 = vsyncpa [#allocation3 + $0x1], 0  ;;  %s592_s12 = smov 0   ;;  %s594_s13 = smov 0  }
   0x2   :  { %s596_s14 = smov 0   ;;  %s598_s15 = smov 0  }
   0x3   :  { %s600_s16 = smov 0   ;;  %s602_s17 = smov 0  }
   0x4 LB: > { %s419_s18 = sadd.s32 4294967295, %s570_s17   ;;  %s29_s19 = sadd.s32 1, %s566_s16  ;;  %s570_s17 = sphi %s602_s17, %s17_s17   ;;  %s566_s16 = sphi %s600_s16, %s696_s16   ;;  %s562_s15 = sphi %s598_s15, %s695_s15   ;;  %s558_s14 = sphi %s596_s14, %s694_s14   ;;  %s554_s13 = sphi %s594_s13, %s693_s13   ;;  %s550_s12 = sphi %s592_s12, %s692_s12  }
   0x5   : > { %p31_p0 = scmp.ge.s32.totalorder %s29_s19, 2  ;;  %s38_s20 = sadd.s32 1, %s558_s14 }
   0x6   : > { %p45_p1 = scmp.ne.s32.totalorder %s558_s14, %s554_s13  ;;  %p46_p2 = scmp.eq.s32.totalorder %s570_s17, 0 }
   0x7   : > { %s698_s19 = smov (%p31_p0, %s29_s19), 0  ;;  %p51_p4 = scmp.ne.s32.totalorder %s554_s13, %s550_s12 }
   0x8   : > { %p628_p3 = por %p46_p2, %p45_p1  ;;  %s33_s22 = ssub.s32 %s566_s16, %s698_s19 }
   0x9   : > { %p52_p5 = scmp.eq.s32.totalorder %s419_s18, 0  ;;  %p36_p6 = scmp.eq.s32.totalorder %s33_s22, 0 }
   0xa   : > { %p441_p8 = scmp.lt.s32.totalorder %s570_s17, 2  ;;  %s155_s25 = sand.u32 1, %s558_s14  }
   0xb   : > { %p635_p7 = por %p52_p5, %p51_p4  ;;  %s434_s26 = sshll.u32 %s566_s16, 3 }
   0xc   : > { %s641_s24 = scalar_select %p36_p6, %s558_s14, %s38_s20  }
   0xd   : > { %s423_s27 = sshll.u32 %s155_s25, 3  ;;  %s166_s30 = scalar_lea.hbm %s686_s0, %s434_s26 }
   0xe   : > { %s168_s4 = sshll.u32 %s166_s30, 4  ;;  %s159_s5 = scalar_lea.vmem [#allocation2], %s423_s27  ;;  %s169_s4 = int_to_ptr.hbm [resolvable:$true] %s168_s4 }
   0xf   : > { %s170_s6 = sshll.u32 %s159_s5, 4  ;;  %p438_p9 = pnand %p441_p8, %p628_p3  ;;  %s171_s6 = int_to_ptr.vmem [resolvable:$true] %s170_s6 }
  0x10   : > { %p426_p10 = scmp.ge.s32.totalorder %s570_s17, 1  ;;  %p175_p11 = scmp.lt.s32.totalorder %s570_s17, 3 }
  0x11   : > { %s156_s7 = scalar_lea.sflag [#allocation3], %s155_s25 }
  0x12   : > { %440 = dma.hbm_to_vmem [thread:$0]  (!%p438_p9), %s169_s4, 128, %s171_s6, %s156_s7  }
  0x13   : > { %p176_p12 = pnand %p426_p10, %p175_p11 }
  0x14   : > { %s181_s8 = sand.u32 (!%p176_p12), 1, %s554_s13  }
  0x15   : > { %179 = sbr.rel (%p176_p12) target bundleno = 295 (0x127), region = 28  ;;  %s427_s9 = sshll.u32 (!%p176_p12), %s181_s8, 3 }
  0x16   : > { %s182_s10 = scalar_lea.sflag (!%p176_p12), [#allocation3], %s181_s8  ;;  %s185_s11 = scalar_lea.vmem (!%p176_p12), [#allocation2], %s427_s9 }
  0x1a   : > { %545 = dma.done.wait (%p635_p7), %s182_s10, 128  }
  0x1b   : > { %547 = vsyncadd (%p635_p7), %s182_s10, 4294967168  ;;  %v234_v0 = vld [vmem:[%s185_s11] sm:$0xff]  ;;  %vm248_vm0 = vcmask 1041408   ;;  %v235_v7 = vld [vmem:[%s687_s1] sm:$0xf]  ;;  %vm244_vm1 = vcmask 31744  }
  0x1c   : > { %237 = vst [vmem:[#allocation1] ss:$2 sm:$0xff] %v234_v0  ;;  %p219_p13 = scmp.lt.s32.totalorder %s562_s15, 1  ;;  %vm284_vm2 = vcmask 7168  }
  0x1e   : > { %s700_s15 = smov (!%p219_p13, %s562_s15), 1 }
  0x1f   : > { %s428_s20 = sshll.u32 %s700_s15, 3 }
  0x20   : > { %s225_s23 = scalar_lea.vmem %s688_s2, %s428_s20  ;;  %s232_s27 = scalar_lea.vmem %s689_s3, %s428_s20 }
  0x23   : > { %v238_v1 = vld.sshfl [vmem:[#allocation1] sm:$0xff pattern:$0x75316420]  ;;  %v239_v2 = vld.sshfl [vmem:[#allocation1 + $0x8] sm:$0xff pattern:$0x75316420] }
  0x24   : > { %v242_v3 = vpack.c.bf16 %v238_v1, %v238_v1  ;;  %v243_v4 = vpack.c.bf16 %v239_v2, %v239_v2 }
  0x26   : > { %v250_v5 = vsel %vm248_vm0, %v242_v3, 0  ;;  %v253_v6 = vsel %vm248_vm0, %v243_v4, 0 }
  0x27   : > { %262 = vmatpush.bf16.msra.mxu0 %v250_v5  ;;  %275 = vmatpush.bf16.msra.mxu1 %v253_v6 }
  0x2a   : > { %430 = vmatmul.msk.bf16.vlgmr.msra.gmra.mxu0 %vm244_vm1, %v235_v7  ;;  %431 = vmatmul.msk.bf16.vlgmr.msra.gmra.mxu1 %vm244_vm1, %v235_v7 }
  0xa7   : > { %v264_v8 = vpop.f32.mrf.mxu0  ;;  %v277_v9 = vpop.f32.mrf.mxu1 }
  0xa8   : > { %v281_v10 = vadd.f32 %v277_v9, %v264_v8  ;;  %v286_v11 = vmul.f32 %v264_v8, %v264_v8  ;;  %v287_v12 = vmul.f32 %v277_v9, %v277_v9 }
  0xaa   : > { %282 = vadd.xlane.f32.xlu0 %v281_v10  ;;  %v288_v15 = vadd.f32 %v287_v12, %v286_v11 }
  0xaf   : > { %v266_v13 = vpop.f32.mrf.mxu0  ;;  %v279_v14 = vpop.f32.mrf.mxu1 }
  0xb2   : > { %289 = vadd.xlane.f32.xlu0 %v288_v15 }
 0x11d   : > { %v283_v16 = vpop.xlane.xlu0 %282 }
 0x11e   : > { %285 = vst.msk [vmem:[%s225_s23] sm:$0xff] %vm284_vm2, %v283_v16 }
 0x125   : > { %v290_v17 = vpop.xlane.xlu0 %289 }
 0x126   : > { %291 = vst.msk [vmem:[%s232_s27] sm:$0xff] %vm284_vm2, %v290_v17 }
 0x127 PF: > { %s17_s17 = sadd.s32 1, %s570_s17   ;;  %s692_s12 = smov %s554_s13 }
 0x128   : > { %p14_p0 = scmp.ge.s32.totalorder %s17_s17, 4   ;;  %s693_s13 = smov %s558_s14 }
 0x129   : > { %s694_s14 = smov %s641_s24  ;;  %s695_s15 = smov %s566_s16 }
 0x12a   : > { %s696_s16 = smov %s698_s19  ;;  %16 = sbr.rel (!%p14_p0) target bundleno = 4 (0x4), region = 80 }
 0x12f   :  { %337 = vsyncpa [#allocation3], 1 }
 0x130   :  { %339 = vsyncpa [#allocation3 + $0x1], 1 }

</bundles_post_ra>
